<compile_context>
chip_gen: v6e
topology: v6e:2x2x1
jax: 0.10.0
libtpu: 0.0.40
codegen_flags: <defaults>
</compile_context>

<pallas_src>
from functools import partial

import jax
import jax.numpy as jnp
from jax.experimental import pallas as pl
from jax.experimental.pallas import tpu as pltpu

# ---------------------------------------------------------------------------
# "config" mirroring the pquant config dict consumed by CompressedLayerConv2d
# ---------------------------------------------------------------------------
CONFIG = {
    "quantization_parameters": {
        "default_fractional_bits": 4,
        "default_integer_bits": 3,
        "use_symmetric_quantization": False,   # SAT (not SAT_SYM)
        "enable_quantization": True,
        "use_high_granularity_quantization": False,
        "hgq_gamma": 0.0,
    },
    "pruning_parameters": {
        "enable_pruning": True,
        "pruning_method": "magnitude",
        "threshold": 0.05,
    },
    "training_parameters": {"pruning_first": True},
}


def _round_up(x, m):
    return (x + m - 1) // m * m


def _fixed_quant(x, i_bits, f_bits, symmetric):
    """HGQ-style fixed-point quantizer: kif, k=1, RND rounding, SAT/SAT_SYM."""
    scale = 2.0 ** f_bits
    qmax = 2.0 ** i_bits - 2.0 ** (-f_bits)
    qmin = -qmax if symmetric else -(2.0 ** i_bits)
    # TODO(synk): RND modelled as round-half-up; half-to-even would differ on
    # exact .5-ulp boundaries.
    xq = jnp.floor(x * scale + 0.5) / scale
    return jnp.clip(xq, qmin, qmax)


# ---------------------------------------------------------------------------
# Kernel 1a/1b: prune + quantize weight / bias (one-shot, tiled for weight)
# ---------------------------------------------------------------------------
def _weight_prep_kernel(w_ref, wq_ref, *, i_bits, f_bits, symmetric,
                        enable_quant, enable_prune, prune_thresh,
                        pruning_first):
    w = w_ref[...]

    def _prune(t):
        return jnp.where(jnp.abs(t) >= prune_thresh, t, 0.0)

    if enable_prune and pruning_first:
        w = _prune(w)
    if enable_quant:
        w = _fixed_quant(w, i_bits, f_bits, symmetric)
    if enable_prune and not pruning_first:
        w = _prune(w)
    wq_ref[...] = w.astype(wq_ref.dtype)


def _bias_prep_kernel(b_ref, bq_ref, *, i_bits, f_bits, symmetric,
                      enable_quant):
    b = b_ref[...]
    if enable_quant:
        b = _fixed_quant(b, i_bits, f_bits, symmetric)
    bq_ref[...] = b.astype(bq_ref.dtype)


def _prep_weight(w2d, out_dtype, statics):
    """Prune+quantize a padded 2-D weight matrix on a small 2-D grid."""
    R, C = w2d.shape

    def _pick(d):
        for cand in (256, 128):
            if d % cand == 0:
                return cand
        return d                       # small dim -> full extent

    TR, TC = _pick(R), _pick(C)
    return pl.pallas_call(
        partial(_weight_prep_kernel, **statics),
        out_shape=jax.ShapeDtypeStruct((R, C), out_dtype),
        grid_spec=pltpu.PrefetchScalarGridSpec(
            num_scalar_prefetch=0,
            grid=(R // TR, C // TC),
            in_specs=[pl.BlockSpec((TR, TC), lambda i, j: (i, j))],
            out_specs=pl.BlockSpec((TR, TC), lambda i, j: (i, j))),
        compiler_params=pltpu.CompilerParams(
            dimension_semantics=("parallel", "parallel")),
    )(w2d)


def _prep_bias(b2d, statics):
    return pl.pallas_call(
        partial(_bias_prep_kernel, **statics),
        out_shape=jax.ShapeDtypeStruct(b2d.shape, jnp.float32),
    )(b2d)


# ---------------------------------------------------------------------------
# Kernel 2: tiled matmul with bias folded into the accumulator init
#   out[M,N] = A[M,K] @ B[K,N] + bias   (bias is (1,N) or (M,1))
#   grid = (M tiles, N tiles, K tiles); K innermost = reduction axis
# ---------------------------------------------------------------------------
def _mm_bias_kernel(a_ref, b_ref, bias_ref, o_ref, acc_ref):
    k = pl.program_id(2)

    @pl.when(k == 0)
    def _():
        # bias folded into accumulator init (broadcasts from (1,tn) or (tm,1))
        acc_ref[...] = jnp.broadcast_to(bias_ref[...], acc_ref.shape)

    # native bf16 x bf16 -> f32 on the MXU (no per-step operand upcast)
    acc_ref[...] += jnp.dot(a_ref[...], b_ref[...],
                            preferred_element_type=jnp.float32)

    @pl.when(k == pl.num_programs(2) - 1)
    def _():
        o_ref[...] = acc_ref[...].astype(o_ref.dtype)


def _tiled_matmul_bias(a, b, bias2d, *, tm, tn, tk):
    M, K = a.shape
    K2, N = b.shape
    assert K == K2 and M % tm == 0 and N % tn == 0 and K % tk == 0

    grid = (M // tm, N // tn, K // tk)

    if bias2d.shape[0] == 1:                       # (1, N): per-output-column
        bias_spec = pl.BlockSpec((1, tn), lambda i, j, k: (0, j))
    else:                                          # (M, 1): per-output-row
        bias_spec = pl.BlockSpec((tm, 1), lambda i, j, k: (i, 0))

    itemsize = jnp.dtype(a.dtype).itemsize
    # double-buffered A/B tiles + (out + acc) f32 tiles + slack; cap at 40 MiB
    # so the same budget is safe on v7x (64 MiB physical VMEM).
    vmem_bytes = (2 * (tm * tk + tk * tn) * itemsize
                  + 3 * tm * tn * 4
                  + 2 * (tm + tn) * 4
                  + (1 << 20))
    vmem_limit = int(min(max(2 * vmem_bytes, 16 << 20), 40 << 20))

    cost = pl.CostEstimate(
        flops=2 * M * N * K,
        transcendentals=0,
        bytes_accessed=(a.size * itemsize + b.size * itemsize
                        + bias2d.size * 4 + M * N * 4))

    return pl.pallas_call(
        _mm_bias_kernel,
        out_shape=jax.ShapeDtypeStruct((M, N), jnp.float32),
        grid_spec=pltpu.PrefetchScalarGridSpec(
            num_scalar_prefetch=0,
            grid=grid,
            in_specs=[
                pl.BlockSpec((tm, tk), lambda i, j, k: (i, k)),   # A
                pl.BlockSpec((tk, tn), lambda i, j, k: (k, j)),   # B
                bias_spec,
            ],
            out_specs=pl.BlockSpec((tm, tn), lambda i, j, k: (i, j)),
            scratch_shapes=[pltpu.VMEM((tm, tn), jnp.float32)],
        ),
        compiler_params=pltpu.CompilerParams(
            dimension_semantics=("parallel", "parallel", "arbitrary"),
            vmem_limit_bytes=vmem_limit),
        cost_estimate=cost,
    )(a, b, bias2d)


# ---------------------------------------------------------------------------
# Tile-size helper: row tiles, plus a split so >= 2 parallel grid tiles exist
# (keeps both TensorCores busy on v7x / megacore) when the shape allows it.
# ---------------------------------------------------------------------------
def _row_tile(rows, align, other_parallel_tiles):
    m_aligned = _round_up(rows, align)
    if m_aligned <= 1024:
        tm = m_aligned
    elif rows >= 8192:
        tm = 1024
    elif rows >= 2048:
        tm = 512
    else:
        tm = 256
    m_pad = _round_up(rows, tm)
    if (m_pad // tm) * other_parallel_tiles < 2 and tm >= 2 * align:
        tm = _round_up((rows + 1) // 2, align)
        m_pad = _round_up(rows, tm)
    return tm, m_pad


# ---------------------------------------------------------------------------
# Wrapper: prep kernels + im2col layout + tiled matmul
# ---------------------------------------------------------------------------
def compressed_conv2d(x_nchw, weight_oihw, bias, *, stride=1, padding=1,
                      dilation=1, config=CONFIG):
    qp = config["quantization_parameters"]
    pp = config["pruning_parameters"]
    tp = config["training_parameters"]

    N, Cin, H, W = x_nchw.shape
    Cout, Cin_w, KH, KW = weight_oihw.shape
    assert Cin == Cin_w, "groups != 1 not supported"  # TODO(synk): grouped conv

    Ho = (H + 2 * padding - dilation * (KH - 1) - 1) // stride + 1
    Wo = (W + 2 * padding - dilation * (KW - 1) - 1) // stride + 1
    rows = N * Ho * Wo
    K = KH * KW * Cin
    K_pad = _round_up(K, 128)

    i_bits = float(qp["default_integer_bits"])
    f_bits = float(qp["default_fractional_bits"])
    enable_quant = bool(qp["enable_quantization"])
    w_statics = dict(i_bits=i_bits, f_bits=f_bits,
                     symmetric=bool(qp["use_symmetric_quantization"]),
                     enable_quant=enable_quant,
                     enable_prune=bool(pp["enable_pruning"]),
                     prune_thresh=float(pp["threshold"]),
                     pruning_first=bool(tp["pruning_first"]))
    b_statics = dict(i_bits=i_bits, f_bits=f_bits,
                     symmetric=bool(qp["use_symmetric_quantization"]),
                     enable_quant=enable_quant)

    # bf16 operands are the MXU's native mode; kif-quantized weights stay
    # bit-exact in bf16 only while i+f fits the 8-bit significand.
    compute_dtype = (jnp.bfloat16 if (enable_quant and i_bits + f_bits <= 8.0)
                     else jnp.float32)

    narrow = Cout < 128          # transposed formulation: Cout -> sublanes

    TK = 512 if K_pad % 512 == 0 else (256 if K_pad % 256 == 0 else 128)
    if narrow:
        Cout_sub = _round_up(Cout, 16)          # sublane dim (bf16-friendly)
        TM, M_pad = _row_tile(rows, 128, 1)     # rows live on the lane dim
    else:
        Cout_pad = _round_up(Cout, 128)
        TN = 512 if Cout_pad % 512 == 0 else (256 if Cout_pad % 256 == 0
                                              else 128)
        TM, M_pad = _row_tile(rows, 8, Cout_pad // TN)

    if bias is None:
        bias = jnp.zeros((Cout,), jnp.float32)

    def _run(x_nchw, weight_oihw, bias):
        if narrow:
            # ---- weight/bias prep: W^T laid out (Cout_sub, K_pad) ----------
            w_t = jnp.transpose(weight_oihw, (0, 2, 3, 1)).reshape(Cout, K)
            w2 = jnp.pad(w_t.astype(jnp.float32),
                         ((0, Cout_sub - Cout), (0, K_pad - K)))
            wq = _prep_weight(w2, compute_dtype, w_statics)
            b2 = jnp.pad(bias.astype(jnp.float32).reshape(Cout, 1),
                         ((0, Cout_sub - Cout), (0, 0)))
            bq = _prep_bias(b2, b_statics)

            # ---- transposed im2col (K_pad, M_pad), built in bf16 ------------
            xc = jnp.transpose(x_nchw, (1, 0, 2, 3))          # (Cin,N,H,W)
            xp = jnp.pad(xc, ((0, 0), (0, 0),
                              (padding, padding), (padding, padding)))
            xp = xp.astype(compute_dtype)
            taps = []
            for r in range(KH):
                for c in range(KW):
                    r0, c0 = r * dilation, c * dilation
                    taps.append(
                        xp[:, :,
                           r0: r0 + (Ho - 1) * stride + 1: stride,
                           c0: c0 + (Wo - 1) * stride + 1: stride]
                        .reshape(Cin, rows))
            pt = jnp.concatenate(taps, axis=0)                # (K, rows)
            pt = jnp.pad(pt, ((0, K_pad - K), (0, M_pad - rows)))

            # out^T = W^T @ patches^T : (Cout_sub, M_pad) — no 128-lane padding
            out = _tiled_matmul_bias(wq, pt, bq, tm=Cout_sub, tn=TM, tk=TK)
            out = out[:Cout, :rows].reshape(Cout, N, Ho, Wo)
            out = jnp.transpose(out, (1, 0, 2, 3))            # NCHW
        else:
            # ---- weight/bias prep: (K_pad, Cout_pad) ------------------------
            w_t = jnp.transpose(weight_oihw, (2, 3, 1, 0)).reshape(K, Cout)
            w2 = jnp.pad(w_t.astype(jnp.float32),
                         ((0, K_pad - K), (0, Cout_pad - Cout)))
            wq = _prep_weight(w2, compute_dtype, w_statics)
            b2 = jnp.pad(bias.astype(jnp.float32).reshape(1, Cout),
                         ((0, 0), (0, Cout_pad - Cout)))
            bq = _prep_bias(b2, b_statics)

            # ---- im2col (M_pad, K_pad), built in bf16 -----------------------
            xh = jnp.transpose(x_nchw, (0, 2, 3, 1))          # NHWC
            xp = jnp.pad(xh, ((0, 0), (padding, padding),
                              (padding, padding), (0, 0)))
            xp = xp.astype(compute_dtype)
            taps = []
            for r in range(KH):
                for c in range(KW):
                    r0, c0 = r * dilation, c * dilation
                    taps.append(xp[:,
                                   r0: r0 + (Ho - 1) * stride + 1: stride,
                                   c0: c0 + (Wo - 1) * stride + 1: stride, :])
            p = jnp.concatenate(taps, axis=-1).reshape(rows, K)
            p = jnp.pad(p, ((0, M_pad - rows), (0, K_pad - K)))

            out = _tiled_matmul_bias(p, wq, bq, tm=TM, tn=TN, tk=TK)
            out = out[:rows, :Cout].reshape(N, Ho, Wo, Cout)
            out = jnp.transpose(out, (0, 3, 1, 2))            # NCHW
        return out.astype(x_nchw.dtype)

    return jax.jit(_run)(x_nchw, weight_oihw, bias)


# ---------------------------------------------------------------------------
# Pure-JAX reference of the same forward (silent correctness check)
# ---------------------------------------------------------------------------
def _reference(x_nchw, weight_oihw, bias, *, stride, padding, dilation,
               config=CONFIG):
    qp = config["quantization_parameters"]
    pp = config["pruning_parameters"]
    w = weight_oihw
    b = bias
    if pp["enable_pruning"]:
        w = jnp.where(jnp.abs(w) >= pp["threshold"], w, 0.0)
    if qp["enable_quantization"]:
        w = _fixed_quant(w, float(qp["default_integer_bits"]),
                         float(qp["default_fractional_bits"]),
                         qp["use_symmetric_quantization"])
        b = _fixed_quant(b, float(qp["default_integer_bits"]),
                         float(qp["default_fractional_bits"]),
                         qp["use_symmetric_quantization"])
    out = jax.lax.conv_general_dilated(
        x_nchw, w, window_strides=(stride, stride),
        padding=[(padding, padding), (padding, padding)],
        rhs_dilation=(dilation, dilation),
        dimension_numbers=("NCHW", "OIHW", "NCHW"))
    return out + b[None, :, None, None]


def _check(out, ref):
    # Tolerance covers bf16 MXU operand rounding of the activations (the
    # reference conv also defaults to bf16 passes on TPU, so the real gap is
    # normally just accumulation order, far below this bound).
    assert out.shape == ref.shape
    assert jnp.allclose(out, ref, atol=1e-2, rtol=1e-2), \
        float(jnp.max(jnp.abs(out - ref)))


if __name__ == "__main__":
    key = jax.random.PRNGKey(0)
    k_x, k_w, k_b, k_x2, k_w2, k_b2 = jax.random.split(key, 6)

    # Module shapes: Conv2d(in_channels=4, out_channels=8, kernel_size=3,
    #                       stride=1, padding=1, bias=True)  -> narrow-Cout path
    N, Cin, H, W = 2, 4, 16, 16
    Cout, KH, KW = 8, 3, 3
    x = jax.random.normal(k_x, (N, Cin, H, W), dtype=jnp.float32)
    fan_in = Cin * KH * KW
    bound = 1.0 / (fan_in ** 0.5)
    weight = jax.random.uniform(k_w, (Cout, Cin, KH, KW),
                                minval=-bound, maxval=bound, dtype=jnp.float32)
    bias = jax.random.uniform(k_b, (Cout,), minval=-bound, maxval=bound,
                              dtype=jnp.float32)

    out = compressed_conv2d(x, weight, bias, stride=1, padding=1, dilation=1)
    out = jax.block_until_ready(out)
    assert out.shape == (N, Cout, H, W)
    _check(out, _reference(x, weight, bias, stride=1, padding=1, dilation=1))

    # strided conv exercises the im2col windowing
    out2 = compressed_conv2d(x, weight, bias, stride=2, padding=1, dilation=1)
    out2 = jax.block_until_ready(out2)
    _check(out2, _reference(x, weight, bias, stride=2, padding=1, dilation=1))

    # wide-Cout layer exercises the lane-major (standard) matmul path
    N2, Cin2, H2, W2, Cout2 = 2, 8, 8, 8, 128
    x2 = jax.random.normal(k_x2, (N2, Cin2, H2, W2), dtype=jnp.float32)
    bound2 = 1.0 / ((Cin2 * KH * KW) ** 0.5)
    weight2 = jax.random.uniform(k_w2, (Cout2, Cin2, KH, KW),
                                 minval=-bound2, maxval=bound2,
                                 dtype=jnp.float32)
    bias2 = jax.random.uniform(k_b2, (Cout2,), minval=-bound2, maxval=bound2,
                               dtype=jnp.float32)
    out3 = compressed_conv2d(x2, weight2, bias2, stride=1, padding=1,
                             dilation=1)
    out3 = jax.block_until_ready(out3)
    _check(out3, _reference(x2, weight2, bias2, stride=1, padding=1,
                            dilation=1))

    print("KERNEL_OK")
</pallas_src>

<mosaic_0001>
module attributes {stable_mosaic.version = 11 : i64} {
  func.func @_bias_prep_kernel(%arg0: memref<16x1xf32, #tpu.memory_space<vmem>>, %arg1: memref<16x1xf32, #tpu.memory_space<vmem>>) attributes {dimension_semantics = [], scalar_prefetch = 0 : i64, scratch_operands = 0 : i64, tpu.core_type = #tpu.core_type<tc>} {
    %c0 = arith.constant 0 : index
    %c0_0 = arith.constant 0 : index
    %0 = vector.load %arg0[%c0, %c0_0] : memref<16x1xf32, #tpu.memory_space<vmem>>, vector<16x1xf32>
    %cst = arith.constant 1.600000e+01 : f32
    %1 = vector.broadcast %cst : f32 to vector<16x1xf32>
    %2 = arith.mulf %0, %1 : vector<16x1xf32>
    %cst_1 = arith.constant 5.000000e-01 : f32
    %3 = vector.broadcast %cst_1 : f32 to vector<16x1xf32>
    %4 = arith.addf %2, %3 : vector<16x1xf32>
    %5 = math.floor %4 : vector<16x1xf32>
    %cst_2 = arith.constant 1.600000e+01 : f32
    %6 = vector.broadcast %cst_2 : f32 to vector<16x1xf32>
    %7 = arith.divf %5, %6 : vector<16x1xf32>
    %cst_3 = arith.constant -8.000000e+00 : f32
    %cst_4 = arith.constant 7.937500e+00 : f32
    %8 = vector.broadcast %cst_3 : f32 to vector<16x1xf32>
    %9 = arith.maximumf %8, %7 : vector<16x1xf32>
    %10 = vector.broadcast %cst_4 : f32 to vector<16x1xf32>
    %11 = arith.minimumf %10, %9 : vector<16x1xf32>
    %c0_5 = arith.constant 0 : index
    %c0_6 = arith.constant 0 : index
    %12 = vector.load %arg1[%c0_5, %c0_6] : memref<16x1xf32, #tpu.memory_space<vmem>>, vector<16x1xf32>
    tpu.vector_store %arg1[%c0_5, %c0_6], %11 {strides = array<i32>} : memref<16x1xf32, #tpu.memory_space<vmem>>, vector<16x1xf32>,
    return
  }
}

module attributes {stable_mosaic.version = 11 : i64} {
  func.func @_weight_prep_kernel(%arg0: i32, %arg1: i32, %arg2: memref<16x128xf32, #tpu.memory_space<vmem>>, %arg3: memref<16x128xbf16, #tpu.memory_space<vmem>>) attributes {dimension_semantics = [#tpu.dimension_semantics<parallel>, #tpu.dimension_semantics<parallel>], iteration_bounds = array<i64: 1, 1>, scalar_prefetch = 0 : i64, scratch_operands = 0 : i64, tpu.core_type = #tpu.core_type<tc>, window_params = [{transform_indices = @transform_0, window_bounds = array<i64: 16, 128>}, {transform_indices = @transform_1, window_bounds = array<i64: 16, 128>}]} {
    %c0 = arith.constant 0 : index
    %c0_0 = arith.constant 0 : index
    %0 = vector.load %arg2[%c0, %c0_0] : memref<16x128xf32, #tpu.memory_space<vmem>>, vector<16x128xf32>
    %1 = math.absf %0 : vector<16x128xf32>
    %cst = arith.constant 5.000000e-02 : f32
    %2 = vector.broadcast %cst : f32 to vector<16x128xf32>
    %3 = arith.cmpf oge, %1, %2 : vector<16x128xf32>
    %cst_1 = arith.constant 0.000000e+00 : f32
    %4 = vector.broadcast %cst_1 : f32 to vector<16x128xf32>
    %5 = arith.select %3, %0, %4 : vector<16x128xi1>, vector<16x128xf32>
    %cst_2 = arith.constant 1.600000e+01 : f32
    %6 = vector.broadcast %cst_2 : f32 to vector<16x128xf32>
    %7 = arith.mulf %5, %6 : vector<16x128xf32>
    %cst_3 = arith.constant 5.000000e-01 : f32
    %8 = vector.broadcast %cst_3 : f32 to vector<16x128xf32>
    %9 = arith.addf %7, %8 : vector<16x128xf32>
    %10 = math.floor %9 : vector<16x128xf32>
    %cst_4 = arith.constant 1.600000e+01 : f32
    %11 = vector.broadcast %cst_4 : f32 to vector<16x128xf32>
    %12 = arith.divf %10, %11 : vector<16x128xf32>
    %cst_5 = arith.constant -8.000000e+00 : f32
    %cst_6 = arith.constant 7.937500e+00 : f32
    %13 = vector.broadcast %cst_5 : f32 to vector<16x128xf32>
    %14 = arith.maximumf %13, %12 : vector<16x128xf32>
    %15 = vector.broadcast %cst_6 : f32 to vector<16x128xf32>
    %16 = arith.minimumf %15, %14 : vector<16x128xf32>
    %17 = arith.truncf %16 : vector<16x128xf32> to vector<16x128xbf16>
    %c0_7 = arith.constant 0 : index
    %c0_8 = arith.constant 0 : index
    %18 = vector.load %arg3[%c0_7, %c0_8] : memref<16x128xbf16, #tpu.memory_space<vmem>>, vector<16x128xbf16>
    tpu.vector_store %arg3[%c0_7, %c0_8], %17 {strides = array<i32>} : memref<16x128xbf16, #tpu.memory_space<vmem>>, vector<16x128xbf16>,
    return
  }
  func.func @transform_0(%arg0: i32, %arg1: i32) -> (i32, i32) {
    %c0_i32 = arith.constant 0 : i32
    return %arg0, %arg1 : i32, i32
  }
  func.func @transform_1(%arg0: i32, %arg1: i32) -> (i32, i32) {
    %c0_i32 = arith.constant 0 : i32
    return %arg0, %arg1 : i32, i32
  }
}

module attributes {stable_mosaic.version = 11 : i64} {
  func.func @_mm_bias_kernel(%arg0: i32, %arg1: i32, %arg2: i32, %arg3: memref<16x128xbf16, #tpu.memory_space<vmem>>, %arg4: memref<128x256xbf16, #tpu.memory_space<vmem>>, %arg5: memref<16x1xf32, #tpu.memory_space<vmem>>, %arg6: memref<16x256xf32, #tpu.memory_space<vmem>>, %arg7: memref<16x256xf32, #tpu.memory_space<vmem>>) attributes {dimension_semantics = [#tpu.dimension_semantics<parallel>, #tpu.dimension_semantics<parallel>, #tpu.dimension_semantics<arbitrary>], iteration_bounds = array<i64: 1, 2, 1>, scalar_prefetch = 0 : i64, scratch_operands = 1 : i64, tpu.core_type = #tpu.core_type<tc>, window_params = [{transform_indices = @transform_0, window_bounds = array<i64: 16, 128>}, {transform_indices = @transform_1, window_bounds = array<i64: 128, 256>}, {transform_indices = @transform_2, window_bounds = array<i64: 16, 1>}, {transform_indices = @transform_3, window_bounds = array<i64: 16, 256>}]} {
    %c0_i32 = arith.constant 0 : i32
    %0 = arith.cmpi eq, %arg2, %c0_i32 : i32
    %1 = arith.extui %0 : i1 to i32
    %c0_i32_0 = arith.constant 0 : i32
    %2 = arith.cmpi ne, %1, %c0_i32_0 : i32
    scf.if %2 {
      %c0_10 = arith.constant 0 : index
      %c0_11 = arith.constant 0 : index
      %12 = vector.load %arg5[%c0_10, %c0_11] : memref<16x1xf32, #tpu.memory_space<vmem>>, vector<16x1xf32>
      %13 = vector.shape_cast %12 : vector<16x1xf32> to vector<16x1xf32>
      %14 = vector.broadcast %13 : vector<16x1xf32> to vector<16x256xf32>
      %c0_12 = arith.constant 0 : index
      %c0_13 = arith.constant 0 : index
      %15 = vector.load %arg7[%c0_12, %c0_13] : memref<16x256xf32, #tpu.memory_space<vmem>>, vector<16x256xf32>
      tpu.vector_store %arg7[%c0_12, %c0_13], %14 {strides = array<i32>} : memref<16x256xf32, #tpu.memory_space<vmem>>, vector<16x256xf32>,
    } else {
    }
    %c0 = arith.constant 0 : index
    %c0_1 = arith.constant 0 : index
    %3 = vector.load %arg7[%c0, %c0_1] : memref<16x256xf32, #tpu.memory_space<vmem>>, vector<16x256xf32>
    %c0_2 = arith.constant 0 : index
    %c0_3 = arith.constant 0 : index
    %4 = vector.load %arg3[%c0_2, %c0_3] : memref<16x128xbf16, #tpu.memory_space<vmem>>, vector<16x128xbf16>
    %c0_4 = arith.constant 0 : index
    %c0_5 = arith.constant 0 : index
    %5 = vector.load %arg4[%c0_4, %c0_5] : memref<128x256xbf16, #tpu.memory_space<vmem>>, vector<128x256xbf16>
    %cst = arith.constant dense<0.000000e+00> : vector<16x256xf32>
    %6 = tpu.matmul %4, %5, %cst {dimension_numbers = #tpu.dot_dimension_numbers<[1], [0], [0], [1], [0, 0, 1, 1], [], []>} : vector<16x128xbf16>, vector<128x256xbf16>, vector<16x256xf32> -> vector<16x256xf32>
    %7 = arith.addf %3, %6 : vector<16x256xf32>
    %c0_6 = arith.constant 0 : index
    %c0_7 = arith.constant 0 : index
    %8 = vector.load %arg7[%c0_6, %c0_7] : memref<16x256xf32, #tpu.memory_space<vmem>>, vector<16x256xf32>
    tpu.vector_store %arg7[%c0_6, %c0_7], %7 {strides = array<i32>} : memref<16x256xf32, #tpu.memory_space<vmem>>, vector<16x256xf32>,
    %c0_i32_8 = arith.constant 0 : i32
    %9 = arith.cmpi eq, %arg2, %c0_i32_8 : i32
    %10 = arith.extui %9 : i1 to i32
    %c0_i32_9 = arith.constant 0 : i32
    %11 = arith.cmpi ne, %10, %c0_i32_9 : i32
    scf.if %11 {
      %c0_10 = arith.constant 0 : index
      %c0_11 = arith.constant 0 : index
      %12 = vector.load %arg7[%c0_10, %c0_11] : memref<16x256xf32, #tpu.memory_space<vmem>>, vector<16x256xf32>
      %c0_12 = arith.constant 0 : index
      %c0_13 = arith.constant 0 : index
      %13 = vector.load %arg6[%c0_12, %c0_13] : memref<16x256xf32, #tpu.memory_space<vmem>>, vector<16x256xf32>
      tpu.vector_store %arg6[%c0_12, %c0_13], %12 {strides = array<i32>} : memref<16x256xf32, #tpu.memory_space<vmem>>, vector<16x256xf32>,
    } else {
    }
    return
  }
  func.func @transform_0(%arg0: i32, %arg1: i32, %arg2: i32) -> (i32, i32) {
    %c0_i32 = arith.constant 0 : i32
    return %arg0, %arg2 : i32, i32
  }
  func.func @transform_1(%arg0: i32, %arg1: i32, %arg2: i32) -> (i32, i32) {
    %c0_i32 = arith.constant 0 : i32
    return %arg2, %arg1 : i32, i32
  }
  func.func @transform_2(%arg0: i32, %arg1: i32, %arg2: i32) -> (i32, i32) {
    %c0_i32 = arith.constant 0 : i32
    %c0_i32_0 = arith.constant 0 : i32
    return %arg0, %c0_i32 : i32, i32
  }
  func.func @transform_3(%arg0: i32, %arg1: i32, %arg2: i32) -> (i32, i32) {
    %c0_i32 = arith.constant 0 : i32
    return %arg0, %arg1 : i32, i32
  }
}

</mosaic_0001>

<bundles_post_ra>
// kernel: _run.3
= control target key start
LH: loop header
LB: loop body
LE: loop exit
PB: predicated region body
PF: predicated region fallthrough
CT: control target
= control target key end

     0   :  { %s71_s0 = inlined_call_operand.vmem [shape: f32[16,128], index: 0, kind: input, shape index: {}]   ;;  %s72_s1 = inlined_call_operand.vmem [shape: bf16[16,128], index: 1, kind: output, shape index: {}]  }
   0x1   :  { %v8_v0 = vld [vmem:[%s71_s0] sm:$0xff]  ;;  %v9_v1 = vld [vmem:[%s71_s0 + $0x8] sm:$0xff] }
   0x2   :  { %v10_v2 = vand.u32 2147483647, %v8_v0  ;;  %v11_v3 = vand.u32 2147483647, %v9_v1 }
   0x4   :  { %vm12_vm0 = vcmp.ge.f32.partialorder %v10_v2, 0.05  ;;  %vm13_vm1 = vcmp.ge.f32.partialorder %v11_v3, 0.05 }
   0x5   :  { %v14_v4 = vsel %vm12_vm0, %v8_v0, 0.0  ;;  %v15_v5 = vsel %vm13_vm1, %v9_v1, 0.0 }
   0x6   :  { %v16_v6 = vmul.f32 16.0, %v14_v4  ;;  %v17_v7 = vmul.f32 16.0, %v15_v5 }
   0x8   :  { %v18_v8 = vadd.f32 0.5, %v16_v6  ;;  %v19_v9 = vadd.f32 0.5, %v17_v7 }
   0xa   :  { %v20_v10 = vfloor.f32 %v18_v8  ;;  %v21_v11 = vfloor.f32 %v19_v9 }
   0xc   :  { %v23_v12 = vmul.f32 0.0625, %v20_v10  ;;  %v24_v13 = vmul.f32 0.0625, %v21_v11 }
   0xe   :  { %v25_v14 = vmax.f32 %v23_v12, -8.0  ;;  %v26_v15 = vmax.f32 %v24_v13, -8.0 }
  0x10   :  { %v27_v16 = vmin.f32 %v25_v14, 7.9375  ;;  %v28_v17 = vmin.f32 %v26_v15, 7.9375 }
  0x12   :  { %v50_v18 = vpack.c.bf16 %v28_v17, %v27_v16 }
  0x14   :  { %51 = vst [vmem:[%s72_s1] sm:$0xff] %v50_v18  }

// kernel: _run.4
= control target key start
LH: loop header
LB: loop body
LE: loop exit
PB: predicated region body
PF: predicated region fallthrough
CT: control target
= control target key end

     0   :  { %vm23_vm0 = vcmask 7168   ;;  %s52_s0 = inlined_call_operand.vmem [shape: f32[16,1], index: 0, kind: input, shape index: {}]   ;;  %s53_s1 = inlined_call_operand.vmem [shape: f32[16,1], index: 1, kind: output, shape index: {}]  }
   0x1   :  { %v8_v0 = vld [vmem:[%s52_s0] sm:$0xff]  ;;  %v9_v1 = vld [vmem:[%s52_s0 + $0x8] sm:$0xff] }
   0x2   :  { %v10_v2 = vmul.f32 16.0, %v8_v0  ;;  %v11_v3 = vmul.f32 16.0, %v9_v1 }
   0x4   :  { %v12_v4 = vadd.f32 0.5, %v10_v2  ;;  %v13_v5 = vadd.f32 0.5, %v11_v3 }
   0x6   :  { %v14_v6 = vfloor.f32 %v12_v4  ;;  %v15_v7 = vfloor.f32 %v13_v5 }
   0x8   :  { %v17_v8 = vmul.f32 0.0625, %v14_v6  ;;  %v18_v9 = vmul.f32 0.0625, %v15_v7 }
   0xa   :  { %v19_v10 = vmax.f32 %v17_v8, -8.0  ;;  %v20_v11 = vmax.f32 %v18_v9, -8.0 }
   0xc   :  { %v21_v12 = vmin.f32 %v19_v10, 7.9375  ;;  %v22_v13 = vmin.f32 %v20_v11, 7.9375 }
   0xe   :  { %24 = vst.msk [vmem:[%s53_s1] sm:$0xff] %vm23_vm0, %v21_v12  ;;  %25 = vst.msk [vmem:[%s53_s1 + $0x8] sm:$0xff] %vm23_vm0, %v22_v13 }

// kernel: _run.5
= control target key start
LH: loop header
LB: loop body
LE: loop exit
PB: predicated region body
PF: predicated region fallthrough
CT: control target
= control target key end

     0   :  { %s844_s12 = smov 0   ;;  %s846_s13 = smov 0   ;;  %s965_s0 = inlined_call_operand.vmem [shape: bf16[16,128], index: 0, kind: input, shape index: {}]   ;;  %s966_s1 = inlined_call_operand.vmem [shape: bf16[128,512], index: 1, kind: input, shape index: {}]   ;;  %s967_s2 = inlined_call_operand.vmem [shape: f32[16,1], index: 2, kind: input, shape index: {}]   ;;  %s968_s3 = inlined_call_operand.vmem [shape: f32[16,512], index: 3, kind: output, shape index: {}]  }
   0x1   :  { %s848_s14 = smov 0   ;;  %s850_s15 = smov 0  }
   0x2   :  { %s852_s16 = smov 0  }
   0x3 LB: > { %s28_s17 = sadd.s32 1, %s817_s15  ;;  %s680_s18 = sadd.s32 4294967295, %s821_s16   ;;  %s821_s16 = sphi %s852_s16, %s13_s16   ;;  %s817_s15 = sphi %s850_s15, %s973_s15   ;;  %s813_s14 = sphi %s848_s14, %s972_s14   ;;  %s809_s13 = sphi %s846_s13, %s971_s13   ;;  %s805_s12 = sphi %s844_s12, %s970_s12  }
   0x4   : > { %p30_p0 = scmp.ge.s32.totalorder %s28_s17, 2  ;;  %p76_p1 = scmp.ne.s32.totalorder %s809_s13, %s805_s12 }
   0x5   : > { %p77_p2 = scmp.eq.s32.totalorder %s821_s16, 0  ;;  %p134_p4 = scmp.eq.s32.totalorder %s680_s18, 1 }
   0x6   : > { %s975_s17 = smov (%p30_p0, %s28_s17), 0  ;;  %s69_s20 = sadd.s32 1, %s809_s13 }
   0x7   : > { %p78_p3 = por %p77_p2, %p76_p1  ;;  %s65_s19 = ssub.s32 %s817_s15, %s975_s17 }
   0x8   : > { %p67_p5 = scmp.eq.s32.totalorder %s65_s19, 0  ;;  %p879_p6 = por %p134_p4, %p76_p1 }
   0x9   : > { %p685_p7 = scmp.ge.s32.totalorder %s821_s16, 2 }
   0xa   : > { %s884_s22 = scalar_select %p67_p5, %s809_s13, %s69_s20  }
   0xb   : > { %177 = sbr.rel (%p685_p7) target bundleno = 28 (0x1c), region = 24 }
  0x10   : > { %180 = sbr.rel (!%p78_p3) target bundleno = 28 (0x1c), region = 28  ;;  %s182_s23 = sand.u32 (%p78_p3), 1, %s809_s13  }
  0x11   : > { %s714_s24 = sshll.u32 (%p78_p3), %s817_s15, 3  ;;  %s686_s25 = sshll.u32 (%p78_p3), %s182_s23, 7 }
  0x12   : > { %s892_s28 = scalar_lea.vmem (%p78_p3), %s966_s1, %s714_s24  ;;  %s184_s29 = scalar_lea.vmem (%p78_p3), [#allocation3], %s686_s25 }
  0x13   : > { %v249_v0 = vld [vmem:[%s892_s28] sm:$0xff] (%p78_p3)  ;;  %v251_v1 = vld [vmem:[%s892_s28 + $0x10] sm:$0xff] (%p78_p3) }
  0x14   : > { %v253_v2 = vld [vmem:[%s892_s28 + $0x20] sm:$0xff] (%p78_p3)  ;;  %250 = vst [vmem:[%s184_s29] sm:$0xff] (%p78_p3), %v249_v0  ;;  %252 = vst [vmem:[%s184_s29 + $0x8] sm:$0xff] (%p78_p3), %v251_v1  ;;  %v255_v3 = vld [vmem:[%s892_s28 + $0x30] sm:$0xff] (%p78_p3) }
  0x15   : > { %254 = vst [vmem:[%s184_s29 + $0x10] sm:$0xff] %v253_v2  ;;  %v257_v4 = vld [vmem:[%s892_s28 + $0x40] sm:$0xff]  ;;  %v259_v5 = vld [vmem:[%s892_s28 + $0x50] sm:$0xff]  ;;  %256 = vst [vmem:[%s184_s29 + $0x18] sm:$0xff] %v255_v3 }
  0x16   : > { %258 = vst [vmem:[%s184_s29 + $0x20] sm:$0xff] %v257_v4  ;;  %260 = vst [vmem:[%s184_s29 + $0x28] sm:$0xff] %v259_v5  ;;  %v261_v6 = vld [vmem:[%s892_s28 + $0x60] sm:$0xff]  ;;  %v263_v7 = vld [vmem:[%s892_s28 + $0x70] sm:$0xff] }
  0x17   : > { %v265_v8 = vld [vmem:[%s892_s28 + $0x80] sm:$0xff]  ;;  %262 = vst [vmem:[%s184_s29 + $0x30] sm:$0xff] %v261_v6  ;;  %264 = vst [vmem:[%s184_s29 + $0x38] sm:$0xff] %v263_v7  ;;  %v267_v9 = vld [vmem:[%s892_s28 + $0x90] sm:$0xff] }
  0x18   : > { %266 = vst [vmem:[%s184_s29 + $0x40] sm:$0xff] %v265_v8  ;;  %v269_v10 = vld [vmem:[%s892_s28 + $0xa0] sm:$0xff]  ;;  %v271_v11 = vld [vmem:[%s892_s28 + $0xb0] sm:$0xff]  ;;  %268 = vst [vmem:[%s184_s29 + $0x48] sm:$0xff] %v267_v9 }
  0x19   : > { %270 = vst [vmem:[%s184_s29 + $0x50] sm:$0xff] %v269_v10  ;;  %272 = vst [vmem:[%s184_s29 + $0x58] sm:$0xff] %v271_v11  ;;  %v273_v12 = vld [vmem:[%s892_s28 + $0xc0] sm:$0xff]  ;;  %v275_v13 = vld [vmem:[%s892_s28 + $0xd0] sm:$0xff] }
  0x1a   : > { %v277_v14 = vld [vmem:[%s892_s28 + $0xe0] sm:$0xff]  ;;  %274 = vst [vmem:[%s184_s29 + $0x60] sm:$0xff] %v273_v12  ;;  %276 = vst [vmem:[%s184_s29 + $0x68] sm:$0xff] %v275_v13  ;;  %v279_v15 = vld [vmem:[%s892_s28 + $0xf0] sm:$0xff] }
  0x1b   : > { %278 = vst [vmem:[%s184_s29 + $0x70] sm:$0xff] %v277_v14  ;;  %280 = vst [vmem:[%s184_s29 + $0x78] sm:$0xff] %v279_v15 }
  0x1c PF: > { %p689_p8 = scmp.ge.s32.totalorder %s821_s16, 1  ;;  %p285_p9 = scmp.lt.s32.totalorder %s821_s16, 3 }
  0x1e   : > { %p286_p10 = pnand %p689_p8, %p285_p9 }
  0x1f   : > { %s292_s30 = sand.u32 (!%p286_p10), 1, %s805_s12  }
  0x20   : > { %289 = sbr.rel (%p286_p10) target bundleno = 281 (0x119), region = 66  ;;  %s690_s4 = sshll.u32 (!%p286_p10), %s292_s30, 7 }
  0x21   : > { %s921_s9 = scalar_lea.vmem (!%p286_p10), [#allocation3], %s690_s4  ;;  %s691_s18 = sshll.u32 (!%p286_p10), %s292_s30, 5 }
  0x22   : > { %s326_s19 = scalar_lea.vmem (!%p286_p10), [#allocation4], %s691_s18 }
  0x25   : > { %v823_v16 = vmov 0   ;;  %v351_v17 = vld [vmem:[%s967_s2] sm:$0xff]  ;;  %v352_v18 = vld [vmem:[%s967_s2 + $0x8] sm:$0xff]  ;;  %v758_v19 = vld [vmem:[%s921_s9 + $0x74] ss:$8 sps:$4 sm:$0xff]   ;;  %s715_s12 = sshll.u32 (%p879_p6), %s813_s14, 4 }
  0x26   : > { %507 = vmatprep.mubr.bf16.mxu0 %v823_v16  ;;  %757 = vset.pattern.permute.xlu0 %v823_v16  ;;  %v760_v20 = vld [vmem:[%s921_s9 + $0x70] ss:$8 sps:$4 sm:$0xff]   ;;  %v761_v21 = vld [vmem:[%s921_s9 + $0x64] ss:$8 sps:$4 sm:$0xff]   ;;  %v763_v22 = vld [vmem:[%s921_s9 + $0x60] ss:$8 sps:$4 sm:$0xff]   ;;  %s549_s24 = scalar_lea.vmem (%p879_p6), %s968_s3, %s715_s12 }
  0x27   : > { %355 = vperm.xlu0 %757, %v351_v17   ;;  %475 = vmatprep.subr.bf16.mxu0 %v758_v19  ;;  %v764_v23 = vld [vmem:[%s921_s9 + $0x54] ss:$8 sps:$4 sm:$0xff]   ;;  %v766_v24 = vld [vmem:[%s921_s9 + $0x50] ss:$8 sps:$4 sm:$0xff]   ;;  %v767_v25 = vld [vmem:[%s921_s9 + $0x44] ss:$8 sps:$4 sm:$0xff]  }
  0x28   : > { %476 = vmatpush1.bf16.msra.mxu0 %v760_v20  ;;  %v769_v26 = vld [vmem:[%s921_s9 + $0x40] ss:$8 sps:$4 sm:$0xff]   ;;  %v770_v27 = vld [vmem:[%s921_s9 + $0x34] ss:$8 sps:$4 sm:$0xff]   ;;  %v772_v28 = vld [vmem:[%s921_s9 + $0x30] ss:$8 sps:$4 sm:$0xff]  }
  0x29   : > { %477 = vmatprep.subr.bf16.mxu0 %v761_v21  ;;  %v773_v29 = vld [vmem:[%s921_s9 + $0x24] ss:$8 sps:$4 sm:$0xff]   ;;  %v775_v30 = vld [vmem:[%s921_s9 + $0x20] ss:$8 sps:$4 sm:$0xff]   ;;  %v776_v31 = vld [vmem:[%s921_s9 + $0x14] ss:$8 sps:$4 sm:$0xff]  }
  0x2a   : > { %v778_v32 = vld [vmem:[%s921_s9 + $0x10] ss:$8 sps:$4 sm:$0xff]   ;;  %v779_v33 = vld [vmem:[%s921_s9 + $0x4] ss:$8 sps:$4 sm:$0xff]   ;;  %v781_v34 = vld [vmem:[%s921_s9] ss:$8 sps:$4 sm:$0xff]  }
  0x2b   : > { %360 = vperm.xlu0 %757, %v352_v18   ;;  %v782_v35 = vld [vmem:[%s965_s0] sm:$0xff]  }
  0x2c   : > { %478 = vmatpush1.bf16.msra.mxu0 %v763_v22 }
  0x2d   : > { %479 = vmatprep.subr.bf16.mxu0 %v764_v23 }
  0x30   : > { %480 = vmatpush1.bf16.msra.mxu0 %v766_v24 }
  0x31   : > { %481 = vmatprep.subr.bf16.mxu0 %v767_v25 }
  0x34   : > { %482 = vmatpush1.bf16.msra.mxu0 %v769_v26 }
  0x35   : > { %483 = vmatprep.subr.bf16.mxu0 %v770_v27 }
  0x38   : > { %484 = vmatpush1.bf16.msra.mxu0 %v772_v28 }
  0x39   : > { %485 = vmatprep.subr.bf16.mxu0 %v773_v29 }
  0x3c   : > { %486 = vmatpush1.bf16.msra.mxu0 %v775_v30 }
  0x3d   : > { %487 = vmatprep.subr.bf16.mxu0 %v776_v31 }
  0x40   : > { %488 = vmatpush1.bf16.msra.mxu0 %v778_v32 }
  0x41   : > { %489 = vmatprep.subr.bf16.mxu0 %v779_v33 }
  0x44   : > { %490 = vmatpush1.bf16.msra.mxu0 %v781_v34 }
  0x47   : > { %508 = vmatmul.mubr.bf16.vlgmr.msra.gmra.mxu0 %v782_v35 }
  0xa2   : > { %v356_v36 = vpop.permute.xlu0 %355 }
  0xa6   : > { %v361_v41 = vpop.permute.xlu0 %360 }
 0x107   : > { %v509_v37 = vpop.f32.mrf.mxu0 }
 0x108   : > { %v518_v38 = vadd.f32 %v509_v37, %v356_v36 }
 0x109   : > { %v511_v39 = vpop.f32.mrf.mxu0 }
 0x10a   : > { %533 = vst [vmem:[%s326_s19] sm:$0xff] %v518_v38  ;;  %v519_v40 = vadd.f32 %v511_v39, %v356_v36 }
 0x10b   : > { %v513_v42 = vpop.f32.mrf.mxu0 }
 0x10c   : > { %534 = vst [vmem:[%s326_s19 + $0x8] sm:$0xff] %v519_v40  ;;  %v520_v43 = vadd.f32 %v513_v42, %v361_v41  ;;  %543 = sbr.rel (!%p879_p6) target bundleno = 281 (0x119), region = 82 }
 0x10d   : > { %v515_v44 = vpop.f32.mrf.mxu0 }
 0x10e   : > { %535 = vst [vmem:[%s326_s19 + $0x10] sm:$0xff] %v520_v43  ;;  %v521_v45 = vadd.f32 %v515_v44, %v361_v41 }
 0x110   : > { %536 = vst [vmem:[%s326_s19 + $0x18] sm:$0xff] %v521_v45 }
 0x111   : > { %v562_v46 = vld [vmem:[%s326_s19] sm:$0xff] }
 0x112   : > { %563 = vst [vmem:[%s549_s24] sm:$0xff] %v562_v46 }
 0x113   : > { %v564_v47 = vld [vmem:[%s326_s19 + $0x8] sm:$0xff] }
 0x114   : > { %565 = vst [vmem:[%s549_s24 + $0x8] sm:$0xff] %v564_v47 }
 0x115   : > { %v566_v48 = vld [vmem:[%s326_s19 + $0x10] sm:$0xff] }
 0x116   : > { %567 = vst [vmem:[%s549_s24 + $0x20] sm:$0xff] %v566_v48 }
 0x117   : > { %v568_v49 = vld [vmem:[%s326_s19 + $0x18] sm:$0xff] }
 0x118   : > { %569 = vst [vmem:[%s549_s24 + $0x28] sm:$0xff] %v568_v49 }
 0x119 PF: > { %s13_s16 = sadd.s32 1, %s821_s16   ;;  %s970_s12 = smov %s809_s13 }
 0x11a   : > { %p10_p11 = scmp.ge.s32.totalorder %s13_s16, 4   ;;  %s971_s13 = smov %s884_s22 }
 0x11b   : > { %s972_s14 = smov %s817_s15  ;;  %s973_s15 = smov %s975_s17 }
 0x11c   :  { %12 = sbr.rel (!%p10_p11) target bundleno = 3 (0x3), region = 142 }

</bundles_post_ra>
